<compile_context>
chip_gen: v6e
topology: v6e:2x2x1
jax: 0.10.0
libtpu: 0.0.40
codegen_flags: <defaults>
</compile_context>

<pallas_src>
import functools
import random

import jax
import jax.numpy as jnp
from jax.experimental import pallas as pl
from jax.experimental.pallas import tpu as pltpu


# ----------------------------------------------------------------------------
# Speaker-embedding MLP (Linear->tanh->Linear->tanh->Linear): tiny, plain XLA.
# ----------------------------------------------------------------------------
def _affine_layer(spk2d, params):
    h = jnp.tanh(spk2d @ params["w1"] + params["b1"])
    h = jnp.tanh(h @ params["w2"] + params["b2"])
    return h @ params["w3"] + params["b3"]          # (B, 2H)


# ----------------------------------------------------------------------------
# Pallas kernel: per-(b,t)-row normalization over hidden + style application.
# ----------------------------------------------------------------------------
def _mixstyle_kernel(x_ref, mu_ref, sig_ref, o_ref, *, hidden, eps):
    x = x_ref[...].astype(jnp.float32)                      # (bB, tT, H)
    mu = jnp.mean(x, axis=-1, keepdims=True)                # (bB, tT, 1)
    d = x - mu
    # torch.std default is unbiased (correction = 1).  Two-pass form kept on
    # purpose: the one-pass sum/sumsq variant risks cancellation (review note)
    # and the kernel is DMA-bound on all generations anyway.
    var = jnp.sum(d * d, axis=-1, keepdims=True) * (1.0 / (hidden - 1))
    s = jnp.sqrt(var) + eps                                 # std + eps (torch)
    # EUP approximate reciprocal (free slot) + one Newton step on lane-sparse
    # (tT,1) vregs -> ~f32 accuracy without a full divide.
    r = pl.reciprocal(s, approx=True)
    r = r * (2.0 - s * r)
    o_ref[...] = (sig_ref[...].astype(jnp.float32) * (d * r)
                  + mu_ref[...].astype(jnp.float32)).astype(o_ref.dtype)


# ----------------------------------------------------------------------------
# Tiling: batch-aware + generation-aware block selection.
# ----------------------------------------------------------------------------
def _vmem_capacity_bytes():
    try:
        return int(pltpu.get_tpu_info().vmem_capacity_bytes)
    except Exception:
        return 64 << 20          # conservative (v7x-sized) fallback


def _choose_blocks(B, T, H, target_bytes):
    """Pick (bB, tT) so one f32 x block is ~target_bytes and (8,128)-legal."""
    row = H * 4
    if T * row <= target_bytes:
        # Whole sequence fits in one block -> tile over batch instead.
        tT = T
        bB = max(1, target_bytes // (T * row))
        if B >= 2:
            bB = min(bB, (B + 1) // 2)   # keep >=2 grid steps (megacore/v7x)
        bB = min(bB, B)
    else:
        bB = 1
        tT = min(T, max(8, (target_bytes // row) // 8 * 8))
    return bB, tT


# ----------------------------------------------------------------------------
# Forward pass
# ----------------------------------------------------------------------------
def mixstyle2_forward(x, spk_embed, params, *, key, p=0.5, alpha=0.1,
                      eps=1e-6, is_inference=False, gate_u=None):
    """MixStyle2 forward.

    x: (B, T, H), spk_embed: (B, 1, D).
    gate_u: optional float in [0,1] replacing `random.random()` for the p-gate
            (pass 0.0 to force the MixStyle branch deterministically).
    """
    if not is_inference:
        if gate_u is None:
            gate_u = random.random()
        if gate_u > p:
            return x

    B, T, H = x.shape
    assert H > 1, "hidden_size must be > 1 (unbiased std uses 1/(H-1))"
    spk2d = spk_embed.reshape(B, -1).astype(jnp.float32)

    # Tiny MLP + style mixing in plain XLA (fused by XLA with the reshape).
    aff = _affine_layer(spk2d, params)                      # (B, 2H)
    mu1, sig1 = aff[:, :H], aff[:, H:]

    if is_inference:
        mu_mix, sig_mix = mu1, sig1
    else:
        k_beta, k_perm = jax.random.split(key)
        lmda = jax.random.beta(k_beta, alpha, alpha, shape=(B,)).astype(jnp.float32)
        perm = jax.random.permutation(k_perm, B)
        lam = lmda[:, None]
        mu_mix = mu1 * lam + mu1[perm] * (1.0 - lam)
        sig_mix = sig1 * lam + sig1[perm] * (1.0 - lam)

    mu_mix = mu_mix.reshape(B, 1, H).astype(jnp.float32)
    sig_mix = sig_mix.reshape(B, 1, H).astype(jnp.float32)

    # Generation-aware block target + explicit scoped-VMEM limit with headroom.
    if _vmem_capacity_bytes() <= (64 << 20):       # v7x (64 MiB/TC) or unknown
        target_bytes, vmem_limit = 2 << 20, 24 << 20
    else:                                          # v5e / v6e (128 MiB physical)
        target_bytes, vmem_limit = 4 << 20, 48 << 20

    bB, tT = _choose_blocks(B, T, H, target_bytes)
    grid = (pl.cdiv(B, bB), pl.cdiv(T, tT))

    kernel = functools.partial(_mixstyle_kernel, hidden=H, eps=eps)
    return pl.pallas_call(
        kernel,
        out_shape=jax.ShapeDtypeStruct((B, T, H), x.dtype),
        grid_spec=pltpu.PrefetchScalarGridSpec(
            num_scalar_prefetch=0,
            grid=grid,
            in_specs=[
                pl.BlockSpec((bB, tT, H), lambda b, t: (b, t, 0)),   # x
                pl.BlockSpec((bB, 1, H), lambda b, t: (b, 0, 0)),    # mu_mix
                pl.BlockSpec((bB, 1, H), lambda b, t: (b, 0, 0)),    # sig_mix
            ],
            out_specs=pl.BlockSpec((bB, tT, H), lambda b, t: (b, t, 0)),
        ),
        compiler_params=pltpu.CompilerParams(
            dimension_semantics=("parallel", "parallel"),
            vmem_limit_bytes=vmem_limit),
    )(x, mu_mix, sig_mix)


# ----------------------------------------------------------------------------
# Deterministic parameter init (synthetic; shapes from MixStyle2.__init__;
# weights stored (in_dim, out_dim) so y = x @ W + b).
# ----------------------------------------------------------------------------
def init_params(key, spk_embed_dim, hidden_size):
    k1, k2, k3, k4, k5, k6 = jax.random.split(key, 6)

    def xavier(k, fi, fo):
        lim = (6.0 / (fi + fo)) ** 0.5
        return jax.random.uniform(k, (fi, fo), jnp.float32, -lim, lim)

    return dict(
        w1=xavier(k1, spk_embed_dim, spk_embed_dim),
        b1=jax.random.uniform(k2, (1, spk_embed_dim), jnp.float32, -0.1, 0.1),
        w2=xavier(k3, spk_embed_dim, hidden_size),
        b2=jax.random.uniform(k4, (1, hidden_size), jnp.float32, -0.1, 0.1),
        w3=xavier(k5, hidden_size, 2 * hidden_size),
        b3=jax.random.uniform(k6, (1, 2 * hidden_size), jnp.float32, -0.1, 0.1),
    )


# ----------------------------------------------------------------------------
# Pure-JAX reference (for correctness check)
# ----------------------------------------------------------------------------
def ref_forward(x, spk_embed, params, lmda, perm, is_inference):
    B, T, H = x.shape
    spk = spk_embed.reshape(B, -1)
    h = jnp.tanh(spk @ params["w1"] + params["b1"])
    h = jnp.tanh(h @ params["w2"] + params["b2"])
    aff = h @ params["w3"] + params["b3"]
    mu1, sig1 = aff[:, :H], aff[:, H:]
    mu2, sig2 = mu1[perm], sig1[perm]
    mu = jnp.mean(x, axis=-1, keepdims=True)
    sig = jnp.std(x, axis=-1, keepdims=True, ddof=1)
    xn = (x - mu) / (sig + 1e-6)
    if is_inference:
        mu_mix, sig_mix = mu1, sig1
    else:
        lam = lmda[:, None]
        mu_mix = mu1 * lam + mu2 * (1.0 - lam)
        sig_mix = sig1 * lam + sig2 * (1.0 - lam)
    return sig_mix[:, None, :] * xn + mu_mix[:, None, :]


if __name__ == "__main__":
    # batch, seq, hidden_size, spk_embed_dim (module defaults: H=256, D=64)
    B, T, H, D = 2, 64, 256, 64
    root = jax.random.PRNGKey(0)
    kx, ks, kp, krun = jax.random.split(root, 4)

    x = jax.random.normal(kx, (B, T, H), dtype=jnp.float32)
    spk_embed = jax.random.normal(ks, (B, 1, D), dtype=jnp.float32)
    params = init_params(kp, D, H)

    # training path (gate_u=0.0 forces `random.random() > p` to be False)
    out_train = mixstyle2_forward(x, spk_embed, params, key=krun,
                                  is_inference=False, gate_u=0.0)
    out_train = jax.block_until_ready(out_train)

    # inference path
    out_inf = mixstyle2_forward(x, spk_embed, params, key=krun,
                                is_inference=True)
    out_inf = jax.block_until_ready(out_inf)

    # correctness check against pure-JAX reference (same RNG draws)
    k_beta, k_perm = jax.random.split(krun)
    lmda = jax.random.beta(k_beta, 0.1, 0.1, shape=(B,)).astype(jnp.float32)
    perm = jax.random.permutation(k_perm, B)
    ref_train = ref_forward(x, spk_embed, params, lmda, perm, False)
    ref_inf = ref_forward(x, spk_embed, params, lmda, perm, True)

    assert jnp.allclose(out_train, ref_train, rtol=2e-3, atol=2e-3), "train path mismatch"
    assert jnp.allclose(out_inf, ref_inf, rtol=2e-3, atol=2e-3), "inference path mismatch"
    print("KERNEL_OK")
</pallas_src>

<mosaic_0001>
module attributes {stable_mosaic.version = 11 : i64} {
  func.func @_mixstyle_kernel(%arg0: i32, %arg1: i32, %arg2: memref<1x64x256xf32, #tpu.memory_space<vmem>>, %arg3: memref<1x1x256xf32, #tpu.memory_space<vmem>>, %arg4: memref<1x1x256xf32, #tpu.memory_space<vmem>>, %arg5: memref<1x64x256xf32, #tpu.memory_space<vmem>>) attributes {dimension_semantics = [#tpu.dimension_semantics<parallel>, #tpu.dimension_semantics<parallel>], iteration_bounds = array<i64: 2, 1>, scalar_prefetch = 0 : i64, scratch_operands = 0 : i64, tpu.core_type = #tpu.core_type<tc>, window_params = [{transform_indices = @transform_0, window_bounds = array<i64: 1, 64, 256>}, {transform_indices = @transform_1, window_bounds = array<i64: 1, 1, 256>}, {transform_indices = @transform_2, window_bounds = array<i64: 1, 1, 256>}, {transform_indices = @transform_3, window_bounds = array<i64: 1, 64, 256>}]} {
    %c0 = arith.constant 0 : index
    %c0_0 = arith.constant 0 : index
    %c0_1 = arith.constant 0 : index
    %0 = vector.load %arg2[%c0, %c0_0, %c0_1] : memref<1x64x256xf32, #tpu.memory_space<vmem>>, vector<1x64x256xf32>
    %cst = arith.constant dense<0.000000e+00> : vector<1x64xf32>
    %1 = vector.multi_reduction <add>, %0, %cst [2] : vector<1x64x256xf32> to vector<1x64xf32>
    %2 = vector.shape_cast %1 : vector<1x64xf32> to vector<1x64x1xf32>
    %cst_2 = arith.constant 2.560000e+02 : f32
    %3 = vector.broadcast %cst_2 : f32 to vector<1x64x1xf32>
    %4 = arith.divf %2, %3 : vector<1x64x1xf32>
    %5 = vector.broadcast %4 : vector<1x64x1xf32> to vector<1x64x256xf32>
    %6 = arith.subf %0, %5 : vector<1x64x256xf32>
    %7 = arith.mulf %6, %6 : vector<1x64x256xf32>
    %cst_3 = arith.constant dense<0.000000e+00> : vector<1x64xf32>
    %8 = vector.multi_reduction <add>, %7, %cst_3 [2] : vector<1x64x256xf32> to vector<1x64xf32>
    %9 = vector.shape_cast %8 : vector<1x64xf32> to vector<1x64x1xf32>
    %cst_4 = arith.constant 0.00392156886 : f32
    %10 = vector.broadcast %cst_4 : f32 to vector<1x64x1xf32>
    %11 = arith.mulf %9, %10 : vector<1x64x1xf32>
    %12 = math.sqrt %11 : vector<1x64x1xf32>
    %cst_5 = arith.constant 9.99999997E-7 : f32
    %13 = vector.broadcast %cst_5 : f32 to vector<1x64x1xf32>
    %14 = arith.addf %12, %13 : vector<1x64x1xf32>
    %15 = tpu.reciprocal %14 {approx = true} : vector<1x64x1xf32> -> vector<1x64x1xf32>
    %16 = arith.mulf %14, %15 : vector<1x64x1xf32>
    %cst_6 = arith.constant 2.000000e+00 : f32
    %17 = vector.broadcast %cst_6 : f32 to vector<1x64x1xf32>
    %18 = arith.subf %17, %16 : vector<1x64x1xf32>
    %19 = arith.mulf %15, %18 : vector<1x64x1xf32>
    %c0_7 = arith.constant 0 : index
    %c0_8 = arith.constant 0 : index
    %c0_9 = arith.constant 0 : index
    %20 = vector.load %arg4[%c0_7, %c0_8, %c0_9] : memref<1x1x256xf32, #tpu.memory_space<vmem>>, vector<1x1x256xf32>
    %21 = vector.broadcast %19 : vector<1x64x1xf32> to vector<1x64x256xf32>
    %22 = arith.mulf %6, %21 : vector<1x64x256xf32>
    %23 = vector.broadcast %20 : vector<1x1x256xf32> to vector<1x64x256xf32>
    %24 = arith.mulf %23, %22 : vector<1x64x256xf32>
    %c0_10 = arith.constant 0 : index
    %c0_11 = arith.constant 0 : index
    %c0_12 = arith.constant 0 : index
    %25 = vector.load %arg3[%c0_10, %c0_11, %c0_12] : memref<1x1x256xf32, #tpu.memory_space<vmem>>, vector<1x1x256xf32>
    %26 = vector.broadcast %25 : vector<1x1x256xf32> to vector<1x64x256xf32>
    %27 = arith.addf %24, %26 : vector<1x64x256xf32>
    %c0_13 = arith.constant 0 : index
    %c0_14 = arith.constant 0 : index
    %c0_15 = arith.constant 0 : index
    %28 = vector.load %arg5[%c0_13, %c0_14, %c0_15] : memref<1x64x256xf32, #tpu.memory_space<vmem>>, vector<1x64x256xf32>
    tpu.vector_store %arg5[%c0_13, %c0_14, %c0_15], %27 {strides = array<i32>} : memref<1x64x256xf32, #tpu.memory_space<vmem>>, vector<1x64x256xf32>,
    return
  }
  func.func @transform_0(%arg0: i32, %arg1: i32) -> (i32, i32, i32) {
    %c0_i32 = arith.constant 0 : i32
    %c0_i32_0 = arith.constant 0 : i32
    return %arg0, %arg1, %c0_i32 : i32, i32, i32
  }
  func.func @transform_1(%arg0: i32, %arg1: i32) -> (i32, i32, i32) {
    %c0_i32 = arith.constant 0 : i32
    %c0_i32_0 = arith.constant 0 : i32
    %c0_i32_1 = arith.constant 0 : i32
    return %arg0, %c0_i32, %c0_i32_0 : i32, i32, i32
  }
  func.func @transform_2(%arg0: i32, %arg1: i32) -> (i32, i32, i32) {
    %c0_i32 = arith.constant 0 : i32
    %c0_i32_0 = arith.constant 0 : i32
    %c0_i32_1 = arith.constant 0 : i32
    return %arg0, %c0_i32, %c0_i32_0 : i32, i32, i32
  }
  func.func @transform_3(%arg0: i32, %arg1: i32) -> (i32, i32, i32) {
    %c0_i32 = arith.constant 0 : i32
    %c0_i32_0 = arith.constant 0 : i32
    return %arg0, %arg1, %c0_i32 : i32, i32, i32
  }
}

</mosaic_0001>

<bundles_post_ra>
// kernel: tpu_custom_call.1
= control target key start
LH: loop header
LB: loop body
LE: loop exit
PB: predicated region body
PF: predicated region fallthrough
CT: control target
= control target key end

     0   :  { %s1457_s0 = inlined_call_operand.hbm [shape: f32[2,64,256], index: 0, kind: input, shape index: {}]   ;;  %s1458_s1 = inlined_call_operand.hbm [shape: f32[2,1,256], index: 1, kind: input, shape index: {}]   ;;  %s1459_s2 = inlined_call_operand.hbm [shape: f32[2,1,256], index: 2, kind: input, shape index: {}]   ;;  %s1460_s3 = inlined_call_operand.hbm [shape: f32[2,64,256], index: 3, kind: output, shape index: {}]  }
   0x1   :  { %1462 = sst [smem:[#allocation12_spill]] %s1457_s0 }
   0x2   :  { %1463 = sst [smem:[#allocation13_spill]] %s1458_s1 }
   0x3   :  { %1464 = sst [smem:[#allocation14_spill]] %s1459_s2 }
   0x4   :  { %8 = vsyncpa [#allocation3], 0 }
   0x5   :  { %10 = vsyncpa [#allocation3 + $0x1], 0 }
   0x6   :  { %11 = vsyncpa [#allocation6], 0 }
   0x7   :  { %13 = vsyncpa [#allocation6 + $0x1], 0 }
   0x8   :  { %14 = vsyncpa [#allocation4], 0 }
   0x9   :  { %16 = vsyncpa [#allocation4 + $0x1], 0  ;;  %s1060_s12 = smov 0   ;;  %s1062_s13 = smov 0  }
   0xa   :  { %s1064_s14 = smov 0   ;;  %s1066_s15 = smov 0  }
   0xb   :  { %s1068_s16 = smov 0   ;;  %s1070_s17 = smov 0  }
   0xc LB: > { %s1091_s18 = sadd.s32 4294967295, %s1030_s17   ;;  %s728_s19 = sadd.s32 4294967294, %s1030_s17   ;;  %s1030_s17 = sphi %s1070_s17, %s22_s17   ;;  %s1026_s16 = sphi %s1068_s16, %s1480_s16   ;;  %s1022_s15 = sphi %s1066_s15, %s1479_s15   ;;  %s1018_s14 = sphi %s1064_s14, %s1478_s14   ;;  %s1014_s13 = sphi %s1062_s13, %s1477_s13   ;;  %s1010_s12 = sphi %s1060_s12, %s1476_s12  }
   0xd   : > { %s34_s20 = sadd.s32 1, %s1026_s16  ;;  %s43_s21 = sadd.s32 1, %s1018_s14 }
   0xe   : > { %p36_p0 = scmp.ge.s32.totalorder %s34_s20, 2  ;;  %p50_p1 = scmp.ne.s32.totalorder %s1018_s14, %s1014_s13 }
   0xf   : > { %p51_p2 = scmp.eq.s32.totalorder %s1030_s17, 0  ;;  %p56_p3 = scmp.ne.s32.totalorder %s1014_s13, %s1010_s12 }
  0x10   : > { %s1482_s20 = smov (%p36_p0, %s34_s20), 0  ;;  %p57_p5 = scmp.eq.s32.totalorder %s1091_s18, 0 }
  0x11   : > { %p1103_p4 = por %p51_p2, %p50_p1  ;;  %s38_s23 = ssub.s32 %s1026_s16, %s1482_s20 }
  0x12   : > { %p134_p6 = scmp.eq.s32.totalorder %s1091_s18, 1  ;;  %p41_p7 = scmp.eq.s32.totalorder %s38_s23, 0 }
  0x13   : > { %p1111_p8 = por %p57_p5, %p56_p3  ;;  %p140_p10 = scmp.eq.s32.totalorder %s728_s19, 1 }
  0x14   : > { %p1115_p9 = por %p134_p6, %p50_p1  ;;  %p776_p13 = scmp.lt.s32.totalorder %s1030_s17, 2 }
  0x15   : > { %s1120_s26 = scalar_select %p41_p7, %s1018_s14, %s43_s21  }
  0x16   : > { %p1122_p11 = por %p140_p10, %p56_p3  ;;  %s1129_s28 = sand.u32 1, %s1018_s14  }
  0x17   : > { %s184_s29 = sand.u32 1, %s1030_s17   ;;  %s1461_s30 = sshll.u32 %s1129_s28, 1 }
  0x18   : > { %p1135_p0 = pnand %p776_p13, %p1103_p4  ;;  %s751_s5 = sshll.u32 %s1026_s16, 5 }
  0x19   : > { %s1470_s1 = sld [smem:[#allocation13_spill]]  ;;  %s188_s9 = scalar_lea.vmem [#allocation5], %s1461_s30 }
  0x1a   : > { %s196_s10 = sshll.u32 %s188_s9, 4  ;;  %s1471_s2 = sld [smem:[#allocation14_spill]]  ;;  %s197_s10 = int_to_ptr.vmem [resolvable:$true] %s196_s10 }
  0x1b   : > { %s1150_s22 = scalar_lea.sflag [#allocation6], %s184_s29  ;;  %p864_p1 = pneg %p1135_p0 }
  0x1c   : > { %s875_s23 = scalar_lea.vmem %s197_s10, 32  ;;  %s1032_s6 = smov [#allocation5]  }
  0x1d   : > { %p876_p2 = scmp.ne.s32.totalorder %s197_s10, %s875_s23  ;;  %s880_s7 = sshll.u32 %s1032_s6, 4  ;;  %s881_s7 = int_to_ptr.vmem [resolvable:$false] %s880_s7 }
  0x1e   : > { %s882_s9 = scalar_lea.vmem %s881_s7, 64  ;;  %p883_p5 = scmp.lt.s32.totalorder %s197_s10, %s881_s7 }
  0x1f   : > { %s194_s8 = scalar_lea.hbm %s1470_s1, %s751_s5  ;;  %p878_p3 = pnand %p876_p2, %p864_p1 }
  0x20   : > { %s1148_s21 = scalar_lea.hbm %s1471_s2, %s751_s5  ;;  %p884_p6 = scmp.lt.s32.totalorder %s882_s9, %s875_s23 }
  0x21   : > { %p879_p4 = pneg %p878_p3 }
  0x22   : > { %p885_p7 = por %p884_p6, %p883_p5 }
  0x24   : > { %p886_p10 = pnand %p885_p7, %p879_p4 }
  0x26   : > { %889 = shalt.err (!%p886_p10)
}
  0x27   : > { %768 = dma.hbm_to_vmem [thread:$0]  (!%p1135_p0), %s194_s8, 32, %s197_s10, %s1150_s22  }
  0x28   : > { %p740_p13 = scmp.ge.s32.totalorder %s1030_s17, 1  ;;  %p220_p2 = scmp.lt.s32.totalorder %s1030_s17, 3 }
  0x29   : > { %s731_s5 = sshll.u32 %s1129_s28, 7  ;;  %s750_s11 = sshll.u32 %s1026_s16, 11 }
  0x2a   : > { %p1162_p3 = pnand %p740_p13, %p220_p2  ;;  %s1473_s0 = sld [smem:[#allocation12_spill]] }
  0x2b   : > { %s164_s7 = scalar_lea.vmem [#allocation2], %s731_s5  ;;  %s161_s30 = scalar_lea.sflag [#allocation3], %s1129_s28 }
  0x2c   : > { %s174_s9 = sshll.u32 %s164_s7, 4  ;;  %s1033_s8 = smov [#allocation2]   ;;  %s175_s9 = int_to_ptr.vmem [resolvable:$true] %s174_s9 }
  0x2d   : > { %s903_s1 = scalar_lea.vmem %s175_s9, 2048  ;;  %s908_s10 = sshll.u32 %s1033_s8, 4  ;;  %s909_s10 = int_to_ptr.vmem [resolvable:$false] %s908_s10 }
  0x2e   : > { %p904_p4 = scmp.ne.s32.totalorder %s175_s9, %s903_s1  ;;  %s910_s2 = scalar_lea.vmem %s909_s10, 4096 }
  0x2f   : > { %p911_p7 = scmp.lt.s32.totalorder %s175_s9, %s909_s10  ;;  %p912_p10 = scmp.lt.s32.totalorder %s910_s2, %s903_s1 }
  0x30   : > { %s173_s6 = scalar_lea.hbm %s1473_s0, %s750_s11  ;;  %p906_p5 = pnand %p904_p4, %p864_p1 }
  0x31   : > { %p913_p13 = por %p912_p10, %p911_p7 }
  0x32   : > { %p907_p6 = pneg %p906_p5 }
  0x34   : > { %p914_p2 = pnand %p913_p13, %p907_p6 }
  0x36   : > { %917 = shalt.err (!%p914_p2)
}
  0x37   : > { %s1034_s11 = smov 256   ;;  %s1035_s5 = smov 16  }
  0x38   : > { %765 = dma.hbm_to_vmem [thread:$0]  (!%p1135_p0), %s173_s6, 2048, %s175_s9, %s161_s30, %s1034_s11, %s1034_s11, %s1035_s5  }
  0x39   : > { %s1474_s19 = sshll.u32 %s1129_s28, 1  ;;  %s1036_s1 = smov [#allocation7]  }
  0x3a   : > { %s207_s23 = scalar_lea.vmem [#allocation7], %s1474_s19  ;;  %s936_s2 = sshll.u32 %s1036_s1, 4  ;;  %s937_s2 = int_to_ptr.vmem [resolvable:$false] %s936_s2 }
  0x3b   : > { %s215_s7 = sshll.u32 %s207_s23, 4  ;;  %s938_s8 = scalar_lea.vmem %s937_s2, 64  ;;  %s216_s7 = int_to_ptr.vmem [resolvable:$true] %s215_s7 }
  0x3c   : > { %s931_s0 = scalar_lea.vmem %s216_s7, 32  ;;  %p939_p6 = scmp.lt.s32.totalorder %s216_s7, %s937_s2 }
  0x3d   : > { %p932_p4 = scmp.ne.s32.totalorder %s216_s7, %s931_s0  ;;  %p940_p7 = scmp.lt.s32.totalorder %s938_s8, %s931_s0 }
  0x3f   : > { %p934_p5 = pnand %p932_p4, %p864_p1  ;;  %p941_p10 = por %p940_p7, %p939_p6 }
  0x41   : > { %p935_p12 = pneg %p934_p5 }
  0x43   : > { %p942_p13 = pnand %p941_p10, %p935_p12 }
  0x45   : > { %945 = shalt.err (!%p942_p13)
}
  0x46   : > { %771 = dma.hbm_to_vmem [thread:$0]  (!%p1135_p0), %s1148_s21, 32, %s216_s7, %s1150_s22  }
  0x47   : > { %224 = sbr.rel (%p1162_p3) target bundleno = 446 (0x1be), region = 32  ;;  %s1189_s28 = sand.u32 (!%p1162_p3), 1, %s1014_s13  }
  0x48   : > { %s741_s30 = sshll.u32 (!%p1162_p3), %s1189_s28, 7  ;;  %s227_s0 = scalar_lea.sflag (!%p1162_p3), [#allocation3], %s1189_s28 }
  0x49   : > { %s1195_s6 = scalar_lea.vmem (!%p1162_p3), [#allocation2], %s741_s30 }
  0x4c   : > { %997 = dma.done.wait (%p1111_p8), %s227_s0, 2048  }
  0x4d   : > { %999 = vsyncadd (%p1111_p8), %s227_s0, 4294965248  ;;  %s235_s4 = sand.u32 1, %s1091_s18   ;;  %s742_s21 = sshll.u32 %s1189_s28, 1 }
  0x4e   : > { %s236_s22 = scalar_lea.sflag [#allocation6], %s235_s4  ;;  %s1205_s29 = scalar_lea.vmem [#allocation5], %s742_s21 }
  0x4f   : > { %1001 = dma.done.wait (%p1111_p8), %s236_s22, 64  }
  0x50   : > { %1003 = vsyncadd (%p1111_p8), %s236_s22, 4294967232  ;;  %v283_v0 = vld [vmem:[%s1195_s6] sm:$0xff]  ;;  %v284_v1 = vld [vmem:[%s1195_s6 + $0x8] sm:$0xff]  ;;  %s248_s18 = scalar_lea.vmem [#allocation7], %s742_s21  ;;  %s1345_s24 = scalar_lea.vmem [#allocation8], %s741_s30 }
  0x51   : > { %v287_v2 = vld [vmem:[%s1195_s6 + $0x20] sm:$0xff]  ;;  %v299_v3 = vadd.f32 %v284_v1, %v283_v0  ;;  %v288_v4 = vld [vmem:[%s1195_s6 + $0x28] sm:$0xff]  ;;  %v285_v5 = vld [vmem:[%s1195_s6 + $0x10] sm:$0xff]  ;;  %s753_s9 = sshll.u32 %s1022_s15, 11  ;;  %s597_s10 = sshll.u32 %s1345_s24, 4  ;;  %s1403_s10 = int_to_ptr.vmem [resolvable:$true] %s597_s10 }
  0x52   : > { %v286_v6 = vld [vmem:[%s1195_s6 + $0x18] sm:$0xff]  ;;  %v305_v7 = vadd.f32 %v288_v4, %v287_v2  ;;  %v289_v8 = vld [vmem:[%s1195_s6 + $0x30] sm:$0xff]  ;;  %v291_v12 = vld [vmem:[%s1195_s6 + $0x40] sm:$0xff]  ;;  %s1401_s19 = scalar_lea.hbm %s1460_s3, %s753_s9  ;;  %s581_s15 = scalar_lea.sflag [#allocation4], %s1189_s28 }
  0x53   : > { %v290_v9 = vld [vmem:[%s1195_s6 + $0x38] sm:$0xff]  ;;  %300 = vadd.xlane.f32.xlu0 %v299_v3  ;;  %v302_v10 = vadd.f32 %v286_v6, %v285_v5  ;;  %v292_v13 = vld [vmem:[%s1195_s6 + $0x48] sm:$0xff]  ;;  %v293_v14 = vld [vmem:[%s1195_s6 + $0x50] sm:$0xff]  ;;  %s946_s23 = scalar_lea.vmem %s1403_s10, 2048  ;;  %s1037_s7 = smov [#allocation8]  }
  0x54   : > { %306 = vadd.xlane.f32.xlu1 %v305_v7  ;;  %v308_v11 = vadd.f32 %v290_v9, %v289_v8  ;;  %v294_v15 = vld [vmem:[%s1195_s6 + $0x58] sm:$0xff]  ;;  %v311_v16 = vadd.f32 %v292_v13, %v291_v12  ;;  %v295_v18 = vld [vmem:[%s1195_s6 + $0x60] sm:$0xff]  ;;  %v296_v19 = vld [vmem:[%s1195_s6 + $0x68] sm:$0xff]  ;;  %p947_p8 = scmp.ne.s32.totalorder %s1403_s10, %s946_s23  ;;  %s950_s1 = sshll.u32 %s1037_s7, 4  ;;  %s951_s1 = int_to_ptr.vmem [resolvable:$false] %s950_s1 }
  0x55   : > { %v314_v17 = vadd.f32 %v294_v15, %v293_v14  ;;  %v297_v20 = vld [vmem:[%s1195_s6 + $0x70] sm:$0xff]  ;;  %v298_v21 = vld [vmem:[%s1195_s6 + $0x78] sm:$0xff]  ;;  %v317_v22 = vadd.f32 %v296_v19, %v295_v18  ;;  %s952_s2 = scalar_lea.vmem %s951_s1, 4096  ;;  %p953_p1 = scmp.lt.s32.totalorder %s1403_s10, %s951_s1 }
  0x56   : > { %v320_v23 = vadd.f32 %v298_v21, %v297_v20  ;;  %p948_p12 = pnand %p947_p8, %p1115_p9  ;;  %p954_p3 = scmp.lt.s32.totalorder %s952_s2, %s946_s23 }
  0x57   : > { %303 = vadd.xlane.f32.xlu0 %v302_v10 }
  0x58   : > { %309 = vadd.xlane.f32.xlu1 %v308_v11  ;;  %p949_p0 = pneg %p948_p12  ;;  %p955_p2 = por %p954_p3, %p953_p1 }
  0x5a   : > { %p956_p4 = pnand %p955_p2, %p949_p0 }
  0x5b   : > { %312 = vadd.xlane.f32.xlu0 %v311_v16 }
  0x5c   : > { %315 = vadd.xlane.f32.xlu1 %v314_v17 }
  0x5f   : > { %318 = vadd.xlane.f32.xlu0 %v317_v22 }
  0x60   : > { %321 = vadd.xlane.f32.xlu1 %v320_v23 }
  0xdc   : > { %v301_v24 = vpop.xlane.xlu0 %300 }
  0xdd   : > { %v324_v25 = vmul.f32 0.00390625, %v301_v24  ;;  %v307_v26 = vpop.xlane.xlu1 %306 }
  0xde   : > { %v326_v27 = vmul.f32 0.00390625, %v307_v26 }
  0xdf   : > { %v1227_v28 = vsub.f32 %v283_v0, %v324_v25  ;;  %v1229_v29 = vsub.f32 %v284_v1, %v324_v25 }
  0xe0   : > { %v1231_v30 = vsub.f32 %v287_v2, %v326_v27  ;;  %v1233_v31 = vsub.f32 %v288_v4, %v326_v27  ;;  %v304_v32 = vpop.xlane.xlu0 %303 }
  0xe1   : > { %v325_v33 = vmul.f32 0.00390625, %v304_v32  ;;  %v310_v34 = vpop.xlane.xlu1 %309  ;;  %v348_v35 = vmul.f32 %v1227_v28, %v1227_v28  ;;  %v349_v36 = vmul.f32 %v1229_v29, %v1229_v29 }
  0xe2   : > { %v327_v37 = vmul.f32 0.00390625, %v310_v34  ;;  %v352_v38 = vmul.f32 %v1231_v30, %v1231_v30  ;;  %v353_v39 = vmul.f32 %v1233_v31, %v1233_v31 }
  0xe3   : > { %v1243_v40 = vsub.f32 %v285_v5, %v325_v33  ;;  %v1245_v41 = vsub.f32 %v286_v6, %v325_v33  ;;  %v364_v42 = vadd.f32 %v349_v36, %v348_v35 }
  0xe4   : > { %v1247_v43 = vsub.f32 %v289_v8, %v327_v37  ;;  %v1249_v44 = vsub.f32 %v290_v9, %v327_v37  ;;  %v313_v45 = vpop.xlane.xlu0 %312  ;;  %v370_v48 = vadd.f32 %v353_v39, %v352_v38 }
  0xe5   : > { %v328_v46 = vmul.f32 0.00390625, %v313_v45  ;;  %365 = vadd.xlane.f32.xlu0 %v364_v42  ;;  %v316_v47 = vpop.xlane.xlu1 %315  ;;  %v350_v49 = vmul.f32 %v1243_v40, %v1243_v40  ;;  %v351_v50 = vmul.f32 %v1245_v41, %v1245_v41 }
  0xe6   : > { %v329_v51 = vmul.f32 0.00390625, %v316_v47  ;;  %v354_v52 = vmul.f32 %v1247_v43, %v1247_v43  ;;  %v355_v53 = vmul.f32 %v1249_v44, %v1249_v44 }
  0xe7   : > { %v1259_v54 = vsub.f32 %v291_v12, %v328_v46  ;;  %v1261_v55 = vsub.f32 %v292_v13, %v328_v46  ;;  %v367_v56 = vadd.f32 %v351_v50, %v350_v49 }
  0xe8   : > { %v1263_v57 = vsub.f32 %v293_v14, %v329_v51  ;;  %v1265_v58 = vsub.f32 %v294_v15, %v329_v51  ;;  %v319_v59 = vpop.xlane.xlu0 %318  ;;  %v373_v62 = vadd.f32 %v355_v53, %v354_v52 }
  0xe9   : > { %v330_v60 = vmul.f32 0.00390625, %v319_v59  ;;  %371 = vadd.xlane.f32.xlu0 %v370_v48  ;;  %368 = vadd.xlane.f32.xlu1 %v367_v56  ;;  %v322_v61 = vpop.xlane.xlu1 %321  ;;  %v356_v63 = vmul.f32 %v1259_v54, %v1259_v54  ;;  %v357_v0 = vmul.f32 %v1261_v55, %v1261_v55  ;;  %v510_v56 = vlaneseq }
  0xea   : > { %v331_v1 = vmul.f32 0.00390625, %v322_v61  ;;  %v358_v2 = vmul.f32 %v1263_v57, %v1263_v57  ;;  %v359_v3 = vmul.f32 %v1265_v58, %v1265_v58 }
  0xeb   : > { %v1275_v4 = vsub.f32 %v295_v18, %v330_v60  ;;  %v1277_v5 = vsub.f32 %v296_v19, %v330_v60  ;;  %v376_v6 = vadd.f32 %v357_v0, %v356_v63 }
  0xec   : > { %v1279_v7 = vsub.f32 %v297_v20, %v331_v1  ;;  %v1281_v8 = vsub.f32 %v298_v21, %v331_v1  ;;  %v379_v9 = vadd.f32 %v359_v3, %v358_v2 }
  0xed   : > { %374 = vadd.xlane.f32.xlu1 %v373_v62  ;;  %377 = vadd.xlane.f32.xlu0 %v376_v6  ;;  %v360_v10 = vmul.f32 %v1275_v4, %v1275_v4  ;;  %v361_v11 = vmul.f32 %v1277_v5, %v1277_v5 }
  0xee   : > { %v362_v12 = vmul.f32 %v1279_v7, %v1279_v7  ;;  %v363_v13 = vmul.f32 %v1281_v8, %v1281_v8 }
  0xef   : > { %v382_v14 = vadd.f32 %v361_v11, %v360_v10 }
  0xf0   : > { %v385_v15 = vadd.f32 %v363_v13, %v362_v12 }
  0xf1   : > { %380 = vadd.xlane.f32.xlu1 %v379_v9  ;;  %383 = vadd.xlane.f32.xlu0 %v382_v14 }
  0xf5   : > { %386 = vadd.xlane.f32.xlu1 %v385_v15 }
 0x16e   : > { %v366_v16 = vpop.xlane.xlu0 %365 }
 0x16f   : > { %v388_v17 = vmul.f32 0.003921569, %v366_v16 }
 0x171   : > { %830 = vrsqrt.f32 %v388_v17  ;;  %vm398_vm0 = vcmp.eq.f32.partialorder %v388_v17, inf  ;;  %v401_v38 = vand.u32 2147483648, %v388_v17  ;;  %vm400_vm1 = vcmp.eq.f32.partialorder %v388_v17, 0.0 }
 0x172   : > { %v369_v18 = vpop.xlane.xlu1 %368  ;;  %v372_v19 = vpop.xlane.xlu0 %371 }
 0x173   : > { %v389_v20 = vmul.f32 0.003921569, %v369_v18  ;;  %v390_v21 = vmul.f32 0.003921569, %v372_v19 }
 0x175   : > { %832 = vrsqrt.f32 %v389_v20  ;;  %vm405_vm2 = vcmp.eq.f32.partialorder %v389_v20, inf  ;;  %vm407_vm3 = vcmp.eq.f32.partialorder %v389_v20, 0.0  ;;  %v408_v49 = vand.u32 2147483648, %v389_v20 }
 0x176   : > { %834 = vrsqrt.f32 %v390_v21  ;;  %v375_v22 = vpop.xlane.xlu1 %374  ;;  %v378_v23 = vpop.xlane.xlu0 %377  ;;  %vm412_vm4 = vcmp.eq.f32.partialorder %v390_v21, inf  ;;  %v415_v52 = vand.u32 2147483648, %v390_v21  ;;  %vm414_vm5 = vcmp.eq.f32.partialorder %v390_v21, 0.0 }
 0x177   : > { %v391_v24 = vmul.f32 0.003921569, %v375_v22  ;;  %v392_v25 = vmul.f32 0.003921569, %v378_v23 }
 0x179   : > { %836 = vrsqrt.f32 %v391_v24  ;;  %vm419_vm6 = vcmp.eq.f32.partialorder %v391_v24, inf  ;;  %vm421_vm7 = vcmp.eq.f32.partialorder %v391_v24, 0.0  ;;  %v422_v2 = vand.u32 2147483648, %v391_v24 }
 0x17a   : > { %838 = vrsqrt.f32 %v392_v25  ;;  %v381_v26 = vpop.xlane.xlu1 %380  ;;  %v384_v27 = vpop.xlane.xlu0 %383  ;;  %vm426_vm8 = vcmp.eq.f32.partialorder %v392_v25, inf  ;;  %v429_v9 = vand.u32 2147483648, %v392_v25  ;;  %vm428_vm9 = vcmp.eq.f32.partialorder %v392_v25, 0.0 }
 0x17b   : > { %v1291_v32 = vmul.f32 0.003921569, %v381_v26  ;;  %v1293_v33 = vmul.f32 0.003921569, %v384_v27 }
 0x17d   : > { %840 = vrsqrt.f32 %v1291_v32  ;;  %vm433_vm10 = vcmp.eq.f32.partialorder %v1291_v32, inf  ;;  %vm435_vm11 = vcmp.eq.f32.partialorder %v1291_v32, 0.0  ;;  %v436_v18 = vand.u32 2147483648, %v1291_v32 }
 0x17e   : > { %v831_v34 = vpop.eup %830  ;;  %842 = vrsqrt.f32 %v1293_v33  ;;  %v387_v35 = vpop.xlane.xlu1 %386  ;;  %vm440_vm12 = vcmp.eq.f32.partialorder %v1293_v33, inf  ;;  %vm442_vm13 = vcmp.eq.f32.partialorder %v1293_v33, 0.0 }
 0x17f   : > { %v397_v36 = vmul.f32 %v831_v34, %v388_v17  ;;  %v1297_v37 = vmul.f32 0.003921569, %v387_v35 }
 0x181   : > { %v399_v39 = vsel %vm398_vm0, %v388_v17, %v397_v36  ;;  %844 = vrsqrt.f32 %v1297_v37  ;;  %vm447_vm14 = vcmp.eq.f32.partialorder %v1297_v37, inf  ;;  %vm449_vm15 = vcmp.eq.f32.partialorder %v1297_v37, 0.0 }
 0x182   : > { %v833_v42 = vpop.eup %832  ;;  %v402_v45 = vsel %vm400_vm1, %v401_v38, %v399_v39 }
 0x183   : > { %v835_v46 = vpop.eup %834  ;;  %v1300_v47 = vadd.f32 1e-06, %v402_v45  ;;  %v404_v48 = vmul.f32 %v833_v42, %v389_v20 }
 0x184   : > { %v411_v50 = vmul.f32 %v835_v46, %v390_v21 }
 0x185   : > { %846 = vrcp.f32 %v1300_v47  ;;  %v406_v51 = vsel %vm405_vm2, %v389_v20, %v404_v48  ;;  %v492_v48 = vld [vmem:[%s248_s18] sm:$0x3] }
 0x186   : > { %v837_v53 = vpop.eup %836  ;;  %v409_v59 = vsel %vm407_vm3, %v408_v49, %v406_v51  ;;  %v413_v60 = vsel %vm412_vm4, %v390_v21, %v411_v50  ;;  %v443_v21 = vand.u32 2147483648, %v1293_v33  ;;  %v536_v49 = vld [vmem:[%s1205_s29] sm:$0x3] }
 0x187   : > { %v839_v61 = vpop.eup %838  ;;  %v453_v62 = vadd.f32 1e-06, %v409_v59  ;;  %v416_v63 = vsel %vm414_vm5, %v415_v52, %v413_v60  ;;  %v418_v0 = vmul.f32 %v837_v53, %v391_v24 }
 0x188   : > { %v454_v1 = vadd.f32 1e-06, %v416_v63  ;;  %v425_v3 = vmul.f32 %v839_v61, %v392_v25 }
 0x189   : > { %848 = vrcp.f32 %v453_v62  ;;  %v420_v6 = vsel %vm419_vm6, %v391_v24, %v418_v0 }
 0x18a   : > { %v841_v10 = vpop.eup %840  ;;  %850 = vrcp.f32 %v454_v1  ;;  %v423_v11 = vsel %vm421_vm7, %v422_v2, %v420_v6  ;;  %v427_v12 = vsel %vm426_vm8, %v392_v25, %v425_v3  ;;  %v511_v25 = vshrl.u32 %v510_v56, 7 }
 0x18b   : > { %v843_v13 = vpop.eup %842  ;;  %v455_v14 = vadd.f32 1e-06, %v423_v11  ;;  %v430_v15 = vsel %vm428_vm9, %v429_v9, %v427_v12  ;;  %v432_v16 = vmul.f32 %v841_v10, %v1291_v32 }
 0x18c   : > { %v456_v17 = vadd.f32 1e-06, %v430_v15  ;;  %v439_v19 = vmul.f32 %v843_v13, %v1293_v33  ;;  %v512_v39 = vsub.s32 0, %v511_v25  ;;  %v516_v42 = vsub.s32 1, %v511_v25 }
 0x18d   : > { %852 = vrcp.f32 %v455_v14  ;;  %v434_v20 = vsel %vm433_vm10, %v1291_v32, %v432_v16  ;;  %v450_v32 = vand.u32 2147483648, %v1297_v37 }
 0x18e   : > { %v845_v22 = vpop.eup %844  ;;  %854 = vrcp.f32 %v456_v17  ;;  %v437_v23 = vsel %vm435_vm11, %v436_v18, %v434_v20  ;;  %v441_v24 = vsel %vm440_vm12, %v1293_v33, %v439_v19  ;;  %v1325_v53 = vrot.slane %v492_v48, %v512_v39 }
 0x18f   : > { %v457_v26 = vadd.f32 1e-06, %v437_v23  ;;  %v444_v27 = vsel %vm442_vm13, %v443_v21, %v441_v24  ;;  %v446_v34 = vmul.f32 %v845_v22, %v1297_v37  ;;  %v1329_v60 = vrot.slane %v536_v49, %v512_v39 }
 0x190   : > { %v458_v35 = vadd.f32 1e-06, %v444_v27  ;;  %v1331_v61 = vrot.slane %v536_v49, %v516_v42 }
 0x191   : > { %856 = vrcp.f32 %v457_v26  ;;  %v448_v36 = vsel %vm447_vm14, %v1297_v37, %v446_v34  ;;  %v1327_v37 = vrot.slane %v492_v48, %v516_v42 }
 0x192   : > { %v847_v38 = vpop.eup %846  ;;  %858 = vrcp.f32 %v458_v35  ;;  %v451_v33 = vsel %vm449_vm15, %v450_v32, %v448_v36 }
 0x193   : > { %v468_v45 = vmul.f32 %v847_v38, %v1300_v47  ;;  %v1319_v46 = vadd.f32 1e-06, %v451_v33 }
 0x195   : > { %v476_v50 = vsub.f32 2.0, %v468_v45  ;;  %860 = vrcp.f32 %v1319_v46 }
 0x196   : > { %v849_v51 = vpop.eup %848 }
 0x197   : > { %v851_v52 = vpop.eup %850  ;;  %v484_v56 = vmul.f32 %v847_v38, %v476_v50  ;;  %v469_v59 = vmul.f32 %v849_v51, %v453_v62 }
 0x198   : > { %v470_v47 = vmul.f32 %v851_v52, %v454_v1 }
 0x199   : > { %v493_v63 = vmul.f32 %v484_v56, %v1227_v28  ;;  %v494_v0 = vmul.f32 %v484_v56, %v1229_v29  ;;  %v477_v2 = vsub.f32 2.0, %v469_v59 }
 0x19a   : > { %v853_v3 = vpop.eup %852  ;;  %v478_v6 = vsub.f32 2.0, %v470_v47 }
 0x19b   : > { %v855_v9 = vpop.eup %854  ;;  %v520_v10 = vmul.f32 %v1325_v53, %v493_v63  ;;  %v521_v11 = vmul.f32 %v1327_v37, %v494_v0  ;;  %v485_v12 = vmul.f32 %v849_v51, %v477_v2  ;;  %v471_v62 = vmul.f32 %v853_v3, %v455_v14 }
 0x19c   : > { %v486_v13 = vmul.f32 %v851_v52, %v478_v6  ;;  %v472_v15 = vmul.f32 %v855_v9, %v456_v17 }
 0x19d   : > { %v548_v1 = vadd.f32 %v1329_v60, %v520_v10  ;;  %v549_v16 = vadd.f32 %v1331_v61, %v521_v11  ;;  %v495_v28 = vmul.f32 %v485_v12, %v1243_v40  ;;  %v496_v29 = vmul.f32 %v485_v12, %v1245_v41 }
 0x19e   : > { %v857_v18 = vpop.eup %856  ;;  %v497_v19 = vmul.f32 %v486_v13, %v1231_v30  ;;  %v498_v20 = vmul.f32 %v486_v13, %v1233_v31  ;;  %v479_v21 = vsub.f32 2.0, %v471_v62  ;;  %v480_v22 = vsub.f32 2.0, %v472_v15 }
 0x19f   : > { %v859_v23 = vpop.eup %858  ;;  %564 = vst [vmem:[%s1345_s24] sm:$0xff] %v548_v1  ;;  %565 = vst [vmem:[%s1345_s24 + $0x8] sm:$0xff] %v549_v16  ;;  %v522_v14 = vmul.f32 %v1325_v53, %v495_v28  ;;  %v523_v40 = vmul.f32 %v1327_v37, %v496_v29  ;;  %v473_v41 = vmul.f32 %v857_v18, %v457_v26 }
 0x1a0   : > { %v524_v30 = vmul.f32 %v1325_v53, %v497_v19  ;;  %v525_v31 = vmul.f32 %v1327_v37, %v498_v20  ;;  %v487_v17 = vmul.f32 %v853_v3, %v479_v21  ;;  %v488_v24 = vmul.f32 %v855_v9, %v480_v22 }
 0x1a1   : > { %v550_v25 = vadd.f32 %v1329_v60, %v522_v14  ;;  %v551_v27 = vadd.f32 %v1331_v61, %v523_v40  ;;  %v481_v34 = vsub.f32 2.0, %v473_v41  ;;  %v474_v32 = vmul.f32 %v859_v23, %v458_v35 }
 0x1a2   : > { %v861_v36 = vpop.eup %860  ;;  %v552_v38 = vadd.f32 %v1329_v60, %v524_v30  ;;  %v553_v33 = vadd.f32 %v1331_v61, %v525_v31  ;;  %v499_v26 = vmul.f32 %v487_v17, %v1247_v43  ;;  %v500_v39 = vmul.f32 %v487_v17, %v1249_v44 }
 0x1a3   : > { %566 = vst [vmem:[%s1345_s24 + $0x10] sm:$0xff] %v550_v25  ;;  %567 = vst [vmem:[%s1345_s24 + $0x18] sm:$0xff] %v551_v27  ;;  %v501_v42 = vmul.f32 %v488_v24, %v1259_v54  ;;  %v502_v45 = vmul.f32 %v488_v24, %v1261_v55  ;;  %v489_v48 = vmul.f32 %v857_v18, %v481_v34  ;;  %v482_v49 = vsub.f32 2.0, %v474_v32 }
 0x1a4   : > { %568 = vst [vmem:[%s1345_s24 + $0x20] sm:$0xff] %v552_v38  ;;  %569 = vst [vmem:[%s1345_s24 + $0x28] sm:$0xff] %v553_v33  ;;  %v526_v35 = vmul.f32 %v1325_v53, %v499_v26  ;;  %v527_v50 = vmul.f32 %v1327_v37, %v500_v39  ;;  %v475_v43 = vmul.f32 %v861_v36, %v1319_v46 }
 0x1a5   : > { %v528_v44 = vmul.f32 %v1325_v53, %v501_v42  ;;  %v529_v51 = vmul.f32 %v1327_v37, %v502_v45  ;;  %v503_v54 = vmul.f32 %v489_v48, %v1263_v57  ;;  %v504_v55 = vmul.f32 %v489_v48, %v1265_v58 }
 0x1a6   : > { %v554_v52 = vadd.f32 %v1329_v60, %v526_v35  ;;  %v555_v56 = vadd.f32 %v1331_v61, %v527_v50  ;;  %v490_v59 = vmul.f32 %v859_v23, %v482_v49  ;;  %v483_v47 = vsub.f32 2.0, %v475_v43 }
 0x1a7   : > { %v556_v63 = vadd.f32 %v1329_v60, %v528_v44  ;;  %v557_v46 = vadd.f32 %v1331_v61, %v529_v51  ;;  %v530_v0 = vmul.f32 %v1325_v53, %v503_v54  ;;  %v531_v2 = vmul.f32 %v1327_v37, %v504_v55 }
 0x1a8   : > { %570 = vst [vmem:[%s1345_s24 + $0x30] sm:$0xff] %v554_v52  ;;  %571 = vst [vmem:[%s1345_s24 + $0x38] sm:$0xff] %v555_v56  ;;  %v505_v57 = vmul.f32 %v490_v59, %v1275_v4  ;;  %v506_v58 = vmul.f32 %v490_v59, %v1277_v5  ;;  %v491_v3 = vmul.f32 %v861_v36, %v483_v47 }
 0x1a9   : > { %572 = vst [vmem:[%s1345_s24 + $0x40] sm:$0xff] %v556_v63  ;;  %573 = vst [vmem:[%s1345_s24 + $0x48] sm:$0xff] %v557_v46  ;;  %v558_v6 = vadd.f32 %v1329_v60, %v530_v0  ;;  %v559_v9 = vadd.f32 %v1331_v61, %v531_v2 }
 0x1aa   : > { %v532_v10 = vmul.f32 %v1325_v53, %v505_v57  ;;  %v533_v11 = vmul.f32 %v1327_v37, %v506_v58  ;;  %v507_v12 = vmul.f32 %v491_v3, %v1279_v7  ;;  %v508_v4 = vmul.f32 %v491_v3, %v1281_v8 }
 0x1ab   : > { %574 = vst [vmem:[%s1345_s24 + $0x50] sm:$0xff] %v558_v6  ;;  %575 = vst [vmem:[%s1345_s24 + $0x58] sm:$0xff] %v559_v9 }
 0x1ac   : > { %v560_v5 = vadd.f32 %v1329_v60, %v532_v10  ;;  %v561_v62 = vadd.f32 %v1331_v61, %v533_v11  ;;  %v534_v13 = vmul.f32 %v1325_v53, %v507_v12  ;;  %v535_v15 = vmul.f32 %v1327_v37, %v508_v4 }
 0x1ae   : > { %576 = vst [vmem:[%s1345_s24 + $0x60] sm:$0xff] %v560_v5  ;;  %577 = vst [vmem:[%s1345_s24 + $0x68] sm:$0xff] %v561_v62  ;;  %v562_v7 = vadd.f32 %v1329_v60, %v534_v13  ;;  %v563_v8 = vadd.f32 %v1331_v61, %v535_v15 }
 0x1b0   : > { %578 = vst [vmem:[%s1345_s24 + $0x70] sm:$0xff] %v562_v7  ;;  %579 = vst [vmem:[%s1345_s24 + $0x78] sm:$0xff] %v563_v8 }
 0x1b1   : > { %959 = shalt.err (!%p956_p4)
}
 0x1b2   : > { %s960_s8 = scalar_lea.hbm %s1401_s19, 2048  ;;  %s964_s6 = scalar_lea.hbm %s1460_s3, 4096 }
 0x1b3   : > { %p961_p5 = scmp.ne.s32.totalorder %s1401_s19, %s960_s8  ;;  %p965_p10 = scmp.lt.s32.totalorder %s1401_s19, %s1460_s3 }
 0x1b4   : > { %p966_p13 = scmp.lt.s32.totalorder %s964_s6, %s960_s8 }
 0x1b5   : > { %p962_p6 = pnand %p961_p5, %p1115_p9 }
 0x1b6   : > { %p967_p8 = por %p966_p13, %p965_p10 }
 0x1b7   : > { %p963_p7 = pneg %p962_p6 }
 0x1b9   : > { %p968_p12 = pnand %p967_p8, %p963_p7 }
 0x1bb   : > { %971 = shalt.err (!%p968_p12)
}
 0x1bc   : > { %s1038_s22 = smov 256   ;;  %s1039_s29 = smov 16  }
 0x1bd   : > { %760 = dma.vmem_to_hbm [thread:$0]  (%p1115_p9), %s1403_s10, 2048, %s1401_s19, %s581_s15, %s1038_s22, %s1038_s22, %s1039_s29  }
 0x1be PF: > { %s612_s18 = sand.u32 1, %s1010_s12   ;;  %p1475_p0 = scmp.ge.s32.totalorder %s1030_s17, 2 }
 0x1bf   : > { %s613_s24 = scalar_lea.sflag [#allocation4], %s612_s18 }
 0x1c0   : > { %p773_p1 = pnand %p1475_p0, %p1122_p11 }
 0x1c2   : > { %p774_p3 = pneg %p773_p1 }
 0x1c4   : > { %1005 = dma.done.wait (%p774_p3), %s613_s24, 2048  }
 0x1c5   : > { %1007 = vsyncadd (%p774_p3), %s613_s24, 4294965248  ;;  %s22_s17 = sadd.s32 1, %s1030_s17   ;;  %s1476_s12 = smov %s1014_s13 }
 0x1c6   : > { %p19_p2 = scmp.ge.s32.totalorder %s22_s17, 4   ;;  %s1477_s13 = smov %s1018_s14 }
 0x1c7   : > { %s1478_s14 = smov %s1120_s26  ;;  %s1479_s15 = smov %s1026_s16 }
 0x1c8   : > { %s1480_s16 = smov %s1482_s20  ;;  %21 = sbr.rel (!%p19_p2) target bundleno = 12 (0xc), region = 101 }
 0x1cd   :  { %618 = vsyncpa [#allocation3], 1 }
 0x1ce   :  { %620 = vsyncpa [#allocation3 + $0x1], 1 }
 0x1cf   :  { %621 = vsyncpa [#allocation6], 1 }
 0x1d0   :  { %623 = vsyncpa [#allocation6 + $0x1], 1 }
 0x1d1   :  { %624 = vsyncpa [#allocation4], 1 }
 0x1d2   :  { %626 = vsyncpa [#allocation4 + $0x1], 1 }

</bundles_post_ra>
